<compile_context>
chip_gen: v7x
topology: tpu7x:2x2x1
jax: 0.10.0
libtpu: 0.0.40
codegen_flags: <defaults>
</compile_context>

<pallas_src>
import math

import jax
import jax.numpy as jnp
from jax.experimental import pallas as pl
from jax.experimental.pallas import tpu as pltpu

_LANES = 128
_SUBLANES = 8
_ROW_F32_BYTES = _LANES * 4          # one (1, 128) f32 row
_ROW_I8_BYTES = _LANES               # one (1, 128) int8 row
_VMEM_BUDGET_BYTES = 12 * 1024 * 1024  # conservative: fits v5e's 16 MiB scoped default
_MAX_TILE_ROWS = 8192


# ----------------------------------------------------------------------------
# Layout helpers: flatten a (C, H, W) frame into a lane-dense (rows, 128) slab
# ----------------------------------------------------------------------------
def _to_slab(x):
    """Zero-copy reshape when numel % 1024 == 0, otherwise zero-pads once."""
    flat = x.reshape(-1)
    pad = (-flat.shape[0]) % (_SUBLANES * _LANES)
    if pad:
        flat = jnp.pad(flat, (0, pad))
    return flat.reshape(-1, _LANES)


def _from_slab(y, frame_shape):
    total = math.prod(frame_shape)
    lead = tuple(y.shape[:-2])
    flat = y.reshape(lead + (y.shape[-2] * y.shape[-1],))
    return flat[..., :total].reshape(lead + tuple(frame_shape))


# ----------------------------------------------------------------------------
# Kernels
# ----------------------------------------------------------------------------
def _uint8_cast(x):
    # emulate torch/np uint8 cast for non-negative pixel-like values
    return jnp.bitwise_and(x.astype(jnp.int32), 0xFF).astype(jnp.float32)


def _make_cached_mask_kernel(n_masked):
    """out[i] = f32(where(cached_mask != 0, 0, uint8(frame_i)))."""
    def kernel(*refs):
        m_ref = refs[n_masked]            # (TR, 128) int8 cached mask, 1 = masked
        o_ref = refs[n_masked + 1]        # (n_masked, TR, 128) f32
        m = m_ref[...] != 0
        for i in range(n_masked):         # static unroll over frames
            o_ref[i] = jnp.where(m, 0.0, _uint8_cast(refs[i][...]))
    return kernel


def _make_fused_mask_kernel(n_masked, n_extra, mask_src):
    """First-call kernel: compute mask in-kernel, emit it, and masked-fill frames."""
    n_in = n_masked + n_extra
    def kernel(*refs):
        o_ref = refs[n_in]                # (n_masked, TR, 128) f32
        m_out = refs[n_in + 1]            # (TR, 128) int8 mask to cache
        f0 = refs[mask_src[0]][...]
        f1 = refs[mask_src[1]][...]
        # TODO(synk): VOSProjectionModule / maskprocess are not defined in the reference
        # source; deterministic stand-in segmentation ("object where frames differ a
        # lot"), fused here so the real VOS can later be dropped in-kernel.
        m = jnp.abs(f0 - f1) > 64.0
        m_out[...] = m.astype(jnp.int8)
        for i in range(n_masked):
            o_ref[i] = jnp.where(m, 0.0, _uint8_cast(refs[i][...]))
    return kernel


# ----------------------------------------------------------------------------
# pallas_call wrapper
# ----------------------------------------------------------------------------
def _tile_rows(rows, n_f32_streams):
    """Largest row tile whose double-buffered streams fit the VMEM budget."""
    per_row = n_f32_streams * _ROW_F32_BYTES + _ROW_I8_BYTES
    tr = _VMEM_BUDGET_BYTES // (2 * per_row)      # x2: double-buffered pipeline
    tr = min(tr, _MAX_TILE_ROWS)
    if tr >= rows:
        return rows                               # single block: full (padded) slab
    return max(32, (tr // 32) * 32)               # multiple of 32: int8-friendly tiling


def _masked_fill_call(masked_slabs, extra_slabs=(), mask_slab=None, mask_src=None):
    """Run the masked-fill kernel over lane-dense slabs.

    masked_slabs : list of (rows, 128) f32 slabs to uint8-cast + masked-fill.
    extra_slabs  : extra f32 slabs used only as mask sources (fused first call).
    mask_slab    : cached (rows, 128) int8 mask, or None to compute in-kernel.
    mask_src     : pair of ref indices (into masked+extra) for VOS(src0, src1).
    Returns (out: (n_masked, rows, 128) f32, mask_slab: (rows, 128) int8).
    """
    n_masked = len(masked_slabs)
    rows = masked_slabs[0].shape[0]
    fused = mask_slab is None
    if not fused:
        assert mask_slab.shape == (rows, _LANES)

    n_in_f32 = n_masked + (len(extra_slabs) if fused else 0)
    tr = _tile_rows(rows, n_in_f32 + n_masked)
    grid = (pl.cdiv(rows, tr),)

    slab_spec = pl.BlockSpec((tr, _LANES), lambda r: (r, 0))
    out_spec = pl.BlockSpec((n_masked, tr, _LANES), lambda r: (0, r, 0))
    out_shape_y = jax.ShapeDtypeStruct((n_masked, rows, _LANES), jnp.float32)

    if fused:
        kernel = _make_fused_mask_kernel(n_masked, len(extra_slabs), mask_src)
        in_specs = [slab_spec] * n_in_f32
        out_specs = [out_spec, slab_spec]
        out_shape = (out_shape_y, jax.ShapeDtypeStruct((rows, _LANES), jnp.int8))
        args = list(masked_slabs) + list(extra_slabs)
    else:
        kernel = _make_cached_mask_kernel(n_masked)
        in_specs = [slab_spec] * n_masked + [slab_spec]
        out_specs = out_spec
        out_shape = out_shape_y
        args = list(masked_slabs) + [mask_slab]

    res = pl.pallas_call(
        kernel,
        out_shape=out_shape,
        grid_spec=pltpu.PrefetchScalarGridSpec(
            num_scalar_prefetch=0,
            grid=grid,
            in_specs=in_specs,
            out_specs=out_specs,
        ),
        compiler_params=pltpu.CompilerParams(
            dimension_semantics=("parallel",),   # row-tile axis shards across v7x's 2 TCs
        ),
    )(*args)

    if fused:
        return res[0], res[1]
    return res, mask_slab


# ----------------------------------------------------------------------------
# Module port
# ----------------------------------------------------------------------------
class GetObjectsForOBJLoss:
    """JAX/Pallas port of the PyTorch module (mask computed once on first call, cached).

    NOTE: the mask cache is Python-side mutable state; under jax.jit it is baked at
    trace time (same caveat as the original eager PyTorch module).
    """

    def __init__(self):
        self.mask = None   # cached lane-dense (rows, 128) int8 mask slab

    def __call__(self, outputs, target=None, SR=False):
        frame_shape = tuple(outputs[0].shape)
        if SR:
            masked = [outputs[1].astype(jnp.float32), target.astype(jnp.float32)]
        else:
            masked = [o.astype(jnp.float32) for o in outputs]
        masked_slabs = [_to_slab(f) for f in masked]

        if self.mask is None:
            if SR:
                # refs order: [outputs[1], target, outputs[0]] -> VOS(outputs[0], outputs[1])
                extra = [_to_slab(outputs[0].astype(jnp.float32))]
                y, mask_slab = _masked_fill_call(
                    masked_slabs, extra_slabs=extra, mask_src=(2, 0))
            else:
                # refs order: [outputs[0], outputs[1], ...] -> VOS(outputs[0], outputs[1])
                y, mask_slab = _masked_fill_call(masked_slabs, mask_src=(0, 1))
            self.mask = mask_slab
        else:
            y, _ = _masked_fill_call(masked_slabs, mask_slab=self.mask)

        y = _from_slab(y, frame_shape)
        if SR:
            return (y[0:1], y[1])   # (unsqueeze(masked(outputs[1]), 0), masked(target))
        return y


# ----------------------------------------------------------------------------
# Self-check
# ----------------------------------------------------------------------------
if __name__ == "__main__":
    key = jax.random.PRNGKey(0)
    C, H, W = 4, 16, 16                         # small CHW frames; C*H*W = 1024 = 8 x 128
    k0, k1, k2 = jax.random.split(key, 3)
    # non-negative pixel-like values so the uint8 cast emulation is exact
    frame0 = jax.random.uniform(k0, (C, H, W), jnp.float32, 0.0, 255.0)
    frame1 = jax.random.uniform(k1, (C, H, W), jnp.float32, 0.0, 255.0)
    target = jax.random.uniform(k2, (C, H, W), jnp.float32, 0.0, 255.0)
    outputs = [frame0, frame1]

    # pure-JAX reference (same stand-in segmentation)
    ref_mask = jnp.abs(frame0 - frame1) > 64.0

    def _ref_fill(x):
        x_u8 = jnp.bitwise_and(x.astype(jnp.int32), 0xFF).astype(jnp.float32)
        return jnp.where(ref_mask, 0.0, x_u8)

    ref_flow = jnp.stack([_ref_fill(f) for f in outputs])
    ref_sr_out = _ref_fill(frame1)[None]
    ref_sr_tgt = _ref_fill(target)

    # flow-first module: fused-mask kernel on first call, cached-mask kernel on second
    m1 = GetObjectsForOBJLoss()
    flow_out = jax.block_until_ready(m1(outputs))
    sr_out, sr_tgt = m1(outputs, target=target, SR=True)
    sr_out = jax.block_until_ready(sr_out)
    sr_tgt = jax.block_until_ready(sr_tgt)

    # SR-first module: exercises the fused kernel with an extra mask-source stream
    m2 = GetObjectsForOBJLoss()
    sr_out2, sr_tgt2 = m2(outputs, target=target, SR=True)
    sr_out2 = jax.block_until_ready(sr_out2)
    sr_tgt2 = jax.block_until_ready(sr_tgt2)

    assert flow_out.shape == (2, C, H, W) and flow_out.dtype == jnp.float32
    assert sr_out.shape == (1, C, H, W) and sr_tgt.shape == (C, H, W)
    assert jnp.array_equal(flow_out, ref_flow)
    assert jnp.array_equal(sr_out, ref_sr_out)
    assert jnp.array_equal(sr_tgt, ref_sr_tgt)
    assert jnp.array_equal(sr_out2, ref_sr_out)
    assert jnp.array_equal(sr_tgt2, ref_sr_tgt)

    print("KERNEL_OK")
</pallas_src>

<mosaic_0001>
module attributes {stable_mosaic.version = 11 : i64} {
  func.func @kernel(%arg0: i32, %arg1: memref<8x128xf32, #tpu.memory_space<vmem>>, %arg2: memref<8x128xf32, #tpu.memory_space<vmem>>, %arg3: memref<2x8x128xf32, #tpu.memory_space<vmem>>, %arg4: memref<8x128xi8, #tpu.memory_space<vmem>>) attributes {dimension_semantics = [#tpu.dimension_semantics<parallel>], iteration_bounds = array<i64: 1>, scalar_prefetch = 0 : i64, scratch_operands = 0 : i64, tpu.core_type = #tpu.core_type<tc>, window_params = [{transform_indices = @transform_0, window_bounds = array<i64: 8, 128>}, {transform_indices = @transform_1, window_bounds = array<i64: 8, 128>}, {transform_indices = @transform_2, window_bounds = array<i64: 2, 8, 128>}, {transform_indices = @transform_3, window_bounds = array<i64: 8, 128>}]} {
    %c0 = arith.constant 0 : index
    %c0_0 = arith.constant 0 : index
    %0 = vector.load %arg1[%c0, %c0_0] : memref<8x128xf32, #tpu.memory_space<vmem>>, vector<8x128xf32>
    %c0_1 = arith.constant 0 : index
    %c0_2 = arith.constant 0 : index
    %1 = vector.load %arg2[%c0_1, %c0_2] : memref<8x128xf32, #tpu.memory_space<vmem>>, vector<8x128xf32>
    %2 = arith.subf %0, %1 : vector<8x128xf32>
    %3 = math.absf %2 : vector<8x128xf32>
    %cst = arith.constant 6.400000e+01 : f32
    %4 = vector.broadcast %cst : f32 to vector<8x128xf32>
    %5 = arith.cmpf ogt, %3, %4 : vector<8x128xf32>
    %6 = arith.extui %5 : vector<8x128xi1> to vector<8x128xi8>
    %c0_3 = arith.constant 0 : index
    %c0_4 = arith.constant 0 : index
    %7 = vector.load %arg4[%c0_3, %c0_4] : memref<8x128xi8, #tpu.memory_space<vmem>>, vector<8x128xi8>
    tpu.vector_store %arg4[%c0_3, %c0_4], %6 {strides = array<i32>} : memref<8x128xi8, #tpu.memory_space<vmem>>, vector<8x128xi8>,
    %c0_5 = arith.constant 0 : index
    %c0_6 = arith.constant 0 : index
    %8 = vector.load %arg1[%c0_5, %c0_6] : memref<8x128xf32, #tpu.memory_space<vmem>>, vector<8x128xf32>
    %9 = arith.fptosi %8 : vector<8x128xf32> to vector<8x128xi32>
    %c255_i32 = arith.constant 255 : i32
    %10 = vector.broadcast %c255_i32 : i32 to vector<8x128xi32>
    %11 = arith.andi %9, %10 : vector<8x128xi32>
    %12 = arith.sitofp %11 : vector<8x128xi32> to vector<8x128xf32>
    %cst_7 = arith.constant 0.000000e+00 : f32
    %13 = vector.broadcast %cst_7 : f32 to vector<8x128xf32>
    %14 = arith.select %5, %13, %12 : vector<8x128xi1>, vector<8x128xf32>
    %c0_8 = arith.constant 0 : index
    %c0_9 = arith.constant 0 : index
    %c0_10 = arith.constant 0 : index
    %15 = vector.load %arg3[%c0_8, %c0_9, %c0_10] : memref<2x8x128xf32, #tpu.memory_space<vmem>>, vector<1x8x128xf32>
    %16 = vector.shape_cast %15 : vector<1x8x128xf32> to vector<8x128xf32>
    %17 = vector.shape_cast %14 : vector<8x128xf32> to vector<1x8x128xf32>
    tpu.vector_store %arg3[%c0_8, %c0_9, %c0_10], %17 {strides = array<i32>} : memref<2x8x128xf32, #tpu.memory_space<vmem>>, vector<1x8x128xf32>,
    %c0_11 = arith.constant 0 : index
    %c0_12 = arith.constant 0 : index
    %18 = vector.load %arg2[%c0_11, %c0_12] : memref<8x128xf32, #tpu.memory_space<vmem>>, vector<8x128xf32>
    %19 = arith.fptosi %18 : vector<8x128xf32> to vector<8x128xi32>
    %c255_i32_13 = arith.constant 255 : i32
    %20 = vector.broadcast %c255_i32_13 : i32 to vector<8x128xi32>
    %21 = arith.andi %19, %20 : vector<8x128xi32>
    %22 = arith.sitofp %21 : vector<8x128xi32> to vector<8x128xf32>
    %cst_14 = arith.constant 0.000000e+00 : f32
    %23 = vector.broadcast %cst_14 : f32 to vector<8x128xf32>
    %24 = arith.select %5, %23, %22 : vector<8x128xi1>, vector<8x128xf32>
    %c1 = arith.constant 1 : index
    %c0_15 = arith.constant 0 : index
    %c0_16 = arith.constant 0 : index
    %25 = vector.load %arg3[%c1, %c0_15, %c0_16] : memref<2x8x128xf32, #tpu.memory_space<vmem>>, vector<1x8x128xf32>
    %26 = vector.shape_cast %25 : vector<1x8x128xf32> to vector<8x128xf32>
    %27 = vector.shape_cast %24 : vector<8x128xf32> to vector<1x8x128xf32>
    tpu.vector_store %arg3[%c1, %c0_15, %c0_16], %27 {strides = array<i32>} : memref<2x8x128xf32, #tpu.memory_space<vmem>>, vector<1x8x128xf32>,
    return
  }
  func.func @transform_0(%arg0: i32) -> (i32, i32) {
    %c0_i32 = arith.constant 0 : i32
    %c0_i32_0 = arith.constant 0 : i32
    return %arg0, %c0_i32 : i32, i32
  }
  func.func @transform_1(%arg0: i32) -> (i32, i32) {
    %c0_i32 = arith.constant 0 : i32
    %c0_i32_0 = arith.constant 0 : i32
    return %arg0, %c0_i32 : i32, i32
  }
  func.func @transform_2(%arg0: i32) -> (i32, i32, i32) {
    %c0_i32 = arith.constant 0 : i32
    %c0_i32_0 = arith.constant 0 : i32
    %c0_i32_1 = arith.constant 0 : i32
    return %c0_i32, %arg0, %c0_i32_0 : i32, i32, i32
  }
  func.func @transform_3(%arg0: i32) -> (i32, i32) {
    %c0_i32 = arith.constant 0 : i32
    %c0_i32_0 = arith.constant 0 : i32
    return %arg0, %c0_i32 : i32, i32
  }
}

</mosaic_0001>

<bundles_post_ra>
// kernel: tpu_custom_call.1
= control target key start
LH: loop header
LB: loop body
LE: loop exit
PB: predicated region body
PF: predicated region fallthrough
CT: control target
= control target key end

     0   :  { %9 = vsyncpa [#allocation3], 0  ;;  %s284_s0 = inlined_call_operand.hbm [shape: f32[8,128], index: 0, kind: input, shape index: {}]   ;;  %s285_s1 = inlined_call_operand.hbm [shape: f32[8,128], index: 1, kind: input, shape index: {}]   ;;  %s286_s2 = inlined_call_operand.hbm [shape: f32[2,8,128], index: 2, kind: output, shape index: {0}]   ;;  %s287_s3 = inlined_call_operand.hbm [shape: s8[8,128], index: 3, kind: output, shape index: {1}]  }
   0x1   :  { %10 = vsyncpa [#allocation6], 0 }
   0x2   :  { %11 = vsyncpa [#allocation4], 0 }
   0x3   :  { %12 = vsyncpa [#allocation9], 0  ;;  %s202_s12 = smov [#allocation2]   ;;  %s203_s14 = smov [#allocation5]  }
   0x4   :  { %s19_s13 = sshll.u32 %s202_s12, 4  ;;  %s29_s15 = sshll.u32 %s203_s14, 4  ;;  %s20_s13 = int_to_ptr.vmem [resolvable:$true] %s19_s13  ;;  %s30_s15 = int_to_ptr.vmem [resolvable:$true] %s29_s15 }
   0x5   :  { %s106_s18 = scalar_lea.hbm %s284_s0, 128 }
   0x6   :  { %p107_p0 = scmp.ne.s32.totalorder %s284_s0, %s106_s18  ;;  %p110_p1 = scmp.lt.u32.totalorder %s106_s18, %s284_s0 }
   0x8   :  { %p112_p2 = pnand %p110_p1, %p107_p0 }
   0xa   :  { %115 = shalt.err (!%p112_p2)
}
   0xb   :  { %s116_s23 = scalar_lea.vmem %s20_s13, 128  ;;  %p121_p4 = scmp.lt.s32.totalorder %s20_s13, %s20_s13 }
   0xc   :  { %p117_p3 = scmp.ne.s32.totalorder %s20_s13, %s116_s23  ;;  %p122_p5 = scmp.lt.s32.totalorder %s116_s23, %s116_s23 }
   0xe   :  { %p123_p6 = por %p122_p5, %p121_p4 }
  0x10   :  { %p124_p7 = pnand %p123_p6, %p117_p3 }
  0x12   :  { %127 = shalt.err (!%p124_p7)
}
  0x13   :  { %22 = dma.hbm_to_vmem [thread:$0]  %s284_s0, 128, %s20_s13, [#allocation3]  }
  0x14   :  { %s128_s28 = scalar_lea.hbm %s285_s1, 128 }
  0x15   :  { %p129_p8 = scmp.ne.s32.totalorder %s285_s1, %s128_s28  ;;  %p132_p9 = scmp.lt.u32.totalorder %s128_s28, %s285_s1 }
  0x17   :  { %p134_p10 = pnand %p132_p9, %p129_p8 }
  0x19   :  { %137 = shalt.err (!%p134_p10)
}
  0x1a   :  { %s138_s6 = scalar_lea.vmem %s30_s15, 128  ;;  %p143_p12 = scmp.lt.s32.totalorder %s30_s15, %s30_s15 }
  0x1b   :  { %p139_p11 = scmp.ne.s32.totalorder %s30_s15, %s138_s6  ;;  %p144_p13 = scmp.lt.s32.totalorder %s138_s6, %s138_s6 }
  0x1d   :  { %p145_p0 = por %p144_p13, %p143_p12 }
  0x1f   :  { %p146_p1 = pnand %p145_p0, %p139_p11 }
  0x21   :  { %149 = shalt.err (!%p146_p1)
}
  0x22   :  { %32 = dma.hbm_to_vmem [thread:$0]  %s285_s1, 128, %s30_s15, [#allocation6]  }
  0x23   :  { %194 = dma.done.wait [#allocation3], 128  }
  0x24   :  { %195 = vsyncadd [#allocation3], 4294967168 }
  0x25   :  { %196 = dma.done.wait [#allocation6], 128  }
  0x26   :  { %197 = vsyncadd [#allocation6], 4294967168  ;;  %v41_v0 = vld [vmem:[#allocation2] sm:$0xff]  ;;  %v42_v1 = vld [vmem:[#allocation5] sm:$0xff]  ;;  %s204_s8 = smov [#allocation8]   ;;  %s205_s10 = smov [#allocation7]  }
  0x27   :  { %v43_v2 = vsub.f32 %v41_v0, %v42_v1  ;;  %v95_v3 = vtrunc.f32 %v41_v0  ;;  %v97_v4 = vtrunc.f32 %v42_v1  ;;  %s81_s9 = sshll.u32 %s204_s8, 4  ;;  %s68_s11 = sshll.u32 %s205_s10, 4  ;;  %v206_v12 = vmov 0   ;;  %s82_s9 = int_to_ptr.vmem [resolvable:$true] %s81_s9  ;;  %s253_s11 = int_to_ptr.vmem [resolvable:$true] %s68_s11 }
  0x28   :  { %s150_s1 = scalar_lea.vmem %s82_s9, 32  ;;  %p155_p3 = scmp.lt.s32.totalorder %s82_s9, %s82_s9 }
  0x29   :  { %v44_v5 = vand.u32 2147483647, %v43_v2  ;;  %v96_v6 = vcvt.f32.s32 %v95_v3  ;;  %v98_v7 = vcvt.f32.s32 %v97_v4  ;;  %p151_p2 = scmp.ne.s32.totalorder %s82_s9, %s150_s1  ;;  %p156_p4 = scmp.lt.s32.totalorder %s150_s1, %s150_s1 }
  0x2b   :  { %vm45_vm0 = vcmp.gt.f32.partialorder %v44_v5, 64.0  ;;  %v52_v8 = vand.u32 255, %v96_v6  ;;  %v58_v9 = vand.u32 255, %v98_v7  ;;  %p157_p5 = por %p156_p4, %p155_p3 }
  0x2c   :  { %vm46_vm1 = vmpackc.low %vm45_vm0, %vm45_vm0 }
  0x2d   :  { %vm47_vm2 = vmpackc.even %vm46_vm1, %vm46_vm1  ;;  %v53_v10 = vcvt.s32.f32 %v52_v8  ;;  %v59_v11 = vcvt.s32.f32 %v58_v9  ;;  %p158_p6 = pnand %p157_p5, %p151_p2 }
  0x2e   :  { %v48_v13 = vsel %vm47_vm2, 16843009, %v206_v12 }
  0x2f   :  { %49 = vst [vmem:[#allocation8] sm:$0x3] %v48_v13  ;;  %v54_v14 = vsel %vm45_vm0, 0.0, %v53_v10  ;;  %v60_v15 = vsel %vm45_vm0, 0.0, %v59_v11 }
  0x30   :  { %55 = vst [vmem:[#allocation7] sm:$0xff] %v54_v14  ;;  %62 = vst [vmem:[#allocation7 + $0x8] sm:$0xff] %v60_v15 }
  0x31   :  { %161 = shalt.err (!%p158_p6)
}
  0x32   :  { %s162_s14 = scalar_lea.hbm %s287_s3, 32 }
  0x33   :  { %p163_p7 = scmp.ne.s32.totalorder %s287_s3, %s162_s14  ;;  %p166_p8 = scmp.lt.u32.totalorder %s162_s14, %s287_s3 }
  0x35   :  { %p168_p9 = pnand %p166_p8, %p163_p7 }
  0x37   :  { %171 = shalt.err (!%p168_p9)
}
  0x38   :  { %84 = dma.vmem_to_hbm [thread:$0]  %s82_s9, 32, %s287_s3, [#allocation9]  }
  0x39   :  { %s172_s21 = scalar_lea.vmem %s253_s11, 256  ;;  %p177_p11 = scmp.lt.s32.totalorder %s253_s11, %s253_s11 }
  0x3a   :  { %p173_p10 = scmp.ne.s32.totalorder %s253_s11, %s172_s21  ;;  %p178_p12 = scmp.lt.s32.totalorder %s172_s21, %s172_s21 }
  0x3c   :  { %p179_p13 = por %p178_p12, %p177_p11 }
  0x3e   :  { %p180_p0 = pnand %p179_p13, %p173_p10 }
  0x40   :  { %183 = shalt.err (!%p180_p0)
}
  0x41   :  { %s184_s24 = scalar_lea.hbm %s286_s2, 256 }
  0x42   :  { %p185_p1 = scmp.ne.s32.totalorder %s286_s2, %s184_s24  ;;  %p188_p2 = scmp.lt.u32.totalorder %s184_s24, %s286_s2 }
  0x44   :  { %p190_p3 = pnand %p188_p2, %p185_p1 }
  0x46   :  { %193 = shalt.err (!%p190_p3)
}
  0x47   :  { %s207_s3 = smov 128   ;;  %s208_s29 = smov 8  }
  0x48   :  { %74 = dma.vmem_to_hbm [thread:$0]  %s253_s11, 256, %s286_s2, [#allocation4], %s207_s3, %s207_s3, %s208_s29  }
  0x49   :  { %198 = dma.done.wait [#allocation4], 256  }
  0x4a   :  { %199 = vsyncadd [#allocation4], 4294967040 }
  0x4b   :  { %200 = dma.done.wait [#allocation9], 32  }
  0x4c   :  { %201 = vsyncadd [#allocation9], 4294967264 }
  0x4d   :  { %91 = vsyncpa [#allocation3], 1 }
  0x4e   :  { %92 = vsyncpa [#allocation6], 1 }
  0x4f   :  { %93 = vsyncpa [#allocation4], 1 }
  0x50   :  { %94 = vsyncpa [#allocation9], 1 }

</bundles_post_ra>
